<compile_context>
chip_gen: v6e
topology: v6e:2x2x1
jax: 0.10.0
libtpu: 0.0.40
codegen_flags: <defaults>
</compile_context>

<pallas_src>
import functools

import jax
import jax.numpy as jnp
from jax import lax
from jax.experimental import pallas as pl
from jax.experimental.pallas import tpu as pltpu

ALPHA = 0.25
GAMMA = 2.0

_LANES = 128
_TARGET_BLOCK_ROWS = 2048  # 2048 x 128 x 4B = 1 MiB per input per block


def _focal_terms(x, t, alpha, gamma):
    """Elementwise focal-loss terms (stable BCE-with-logits + focal weight)."""
    x = x.astype(jnp.float32)
    t = t.astype(jnp.float32)
    e = jnp.exp(-jnp.abs(x))
    bce = jnp.maximum(x, 0.0) - x * t + jnp.log1p(e)
    pt = jnp.exp(-bce)
    one_minus_pt = jnp.maximum(1.0 - pt, 0.0)
    if gamma == 2.0:
        mod = one_minus_pt * one_minus_pt
    elif float(gamma).is_integer():
        mod = lax.integer_pow(one_minus_pt, int(gamma))
    else:
        mod = one_minus_pt ** gamma
    return alpha * mod * bce


def _focal_sum_kernel(pred_ref, tgt_ref, out_ref, acc_ref, *,
                      alpha, gamma, block_rows, valid_rows, needs_mask):
    i = pl.program_id(0)

    @pl.when(i == 0)
    def _():
        acc_ref[...] = jnp.zeros_like(acc_ref)

    focal = _focal_terms(pred_ref[...], tgt_ref[...], alpha, gamma)

    if needs_mask:
        # Zero out rows of the (partial) last block that fall past the array.
        row = lax.broadcasted_iota(jnp.int32, focal.shape, 0) + i * block_rows
        focal = jnp.where(row < valid_rows, focal, 0.0)

    # Per-lane partial sums: mostly VPU adds; defer cross-lane reduce.
    acc_ref[...] += jnp.sum(focal, axis=0, keepdims=True)

    @pl.when(i == pl.num_programs(0) - 1)
    def _():
        out_ref[0, 0] = jnp.sum(acc_ref[...])


def focal_loss(pred, target, alpha=ALPHA, gamma=GAMMA):
    """Focal loss with 'mean' reduction (the module's default)."""
    assert pred.shape == target.shape
    n = pred.size

    pred_flat = pred.reshape(-1)
    tgt_flat = target.reshape(-1)

    rows = n // _LANES
    bulk = rows * _LANES
    tail = n - bulk

    total = jnp.zeros((), jnp.float32)

    if rows > 0:
        if tail:
            p2d = lax.slice(pred_flat, (0,), (bulk,)).reshape(rows, _LANES)
            t2d = lax.slice(tgt_flat, (0,), (bulk,)).reshape(rows, _LANES)
        else:
            p2d = pred_flat.reshape(rows, _LANES)
            t2d = tgt_flat.reshape(rows, _LANES)

        block_rows = rows if rows <= _TARGET_BLOCK_ROWS else _TARGET_BLOCK_ROWS
        grid = (pl.cdiv(rows, block_rows),)
        needs_mask = (rows % block_rows) != 0

        kernel = functools.partial(
            _focal_sum_kernel,
            alpha=float(alpha),
            gamma=float(gamma),
            block_rows=int(block_rows),
            valid_rows=int(rows),
            needs_mask=bool(needs_mask),
        )

        bulk_sum = pl.pallas_call(
            kernel,
            out_shape=jax.ShapeDtypeStruct((1, 1), jnp.float32),
            grid_spec=pltpu.PrefetchScalarGridSpec(
                num_scalar_prefetch=0,
                grid=grid,
                in_specs=[
                    pl.BlockSpec((block_rows, _LANES), lambda i: (i, 0)),
                    pl.BlockSpec((block_rows, _LANES), lambda i: (i, 0)),
                ],
                out_specs=pl.BlockSpec(
                    (1, 1), lambda i: (0, 0),
                    memory_space=pltpu.MemorySpace.SMEM),
                scratch_shapes=[pltpu.VMEM((1, _LANES), jnp.float32)],
            ),
            compiler_params=pltpu.CompilerParams(
                dimension_semantics=("arbitrary",)),
        )(p2d, t2d)
        total = total + bulk_sum[0, 0]

    if tail:
        # <128 leftover elements: negligible, compute in plain JAX.
        p_t = lax.slice(pred_flat, (bulk,), (n,))
        t_t = lax.slice(tgt_flat, (bulk,), (n,))
        total = total + jnp.sum(_focal_terms(p_t, t_t, float(alpha),
                                             float(gamma)))

    return total / jnp.float32(n)


def _focal_loss_ref(pred, target, alpha=ALPHA, gamma=GAMMA):
    x = pred.astype(jnp.float32)
    t = target.astype(jnp.float32)
    bce = jnp.maximum(x, 0.0) - x * t + jnp.log1p(jnp.exp(-jnp.abs(x)))
    pt = jnp.exp(-bce)
    return jnp.mean(alpha * (1.0 - pt) ** gamma * bce)


if __name__ == "__main__":
    key = jax.random.PRNGKey(0)
    k1, k2 = jax.random.split(key)
    # pred: logits, target: {0,1} masks — NCHW like the PyTorch module's usage.
    pred = jax.random.normal(k1, (2, 4, 16, 16), jnp.float32) * 2.0
    target = (jax.random.uniform(k2, (2, 4, 16, 16)) > 0.5).astype(jnp.float32)

    loss = focal_loss(pred, target)
    jax.block_until_ready(loss)

    ref = _focal_loss_ref(pred, target)
    assert jnp.allclose(loss, ref, rtol=1e-4, atol=1e-6), (loss, ref)

    print("KERNEL_OK")
</pallas_src>

<mosaic_0001>
module attributes {stable_mosaic.version = 11 : i64} {
  func.func @_focal_sum_kernel(%arg0: i32, %arg1: memref<16x128xf32, #tpu.memory_space<vmem>>, %arg2: memref<16x128xf32, #tpu.memory_space<vmem>>, %arg3: memref<1x1xf32, #tpu.memory_space<smem>>, %arg4: memref<1x128xf32, #tpu.memory_space<vmem>>) attributes {dimension_semantics = [#tpu.dimension_semantics<arbitrary>], iteration_bounds = array<i64: 1>, scalar_prefetch = 0 : i64, scratch_operands = 1 : i64, tpu.core_type = #tpu.core_type<tc>, window_params = [{transform_indices = @transform_0, window_bounds = array<i64: 16, 128>}, {transform_indices = @transform_1, window_bounds = array<i64: 16, 128>}, {transform_indices = @transform_2, window_bounds = array<i64: 1, 1>}]} {
    %c0_i32 = arith.constant 0 : i32
    %0 = arith.cmpi eq, %arg0, %c0_i32 : i32
    %1 = arith.extui %0 : i1 to i32
    %c0_i32_0 = arith.constant 0 : i32
    %2 = arith.cmpi ne, %1, %c0_i32_0 : i32
    scf.if %2 {
      %cst_16 = arith.constant 0.000000e+00 : f32
      %34 = vector.broadcast %cst_16 : f32 to vector<1x128xf32>
      %c0_17 = arith.constant 0 : index
      %c0_18 = arith.constant 0 : index
      %35 = vector.load %arg4[%c0_17, %c0_18] : memref<1x128xf32, #tpu.memory_space<vmem>>, vector<1x128xf32>
      tpu.vector_store %arg4[%c0_17, %c0_18], %34 {strides = array<i32>} : memref<1x128xf32, #tpu.memory_space<vmem>>, vector<1x128xf32>,
    } else {
    }
    %c0 = arith.constant 0 : index
    %c0_1 = arith.constant 0 : index
    %3 = vector.load %arg1[%c0, %c0_1] : memref<16x128xf32, #tpu.memory_space<vmem>>, vector<16x128xf32>
    %c0_2 = arith.constant 0 : index
    %c0_3 = arith.constant 0 : index
    %4 = vector.load %arg2[%c0_2, %c0_3] : memref<16x128xf32, #tpu.memory_space<vmem>>, vector<16x128xf32>
    %5 = math.absf %3 : vector<16x128xf32>
    %cst = arith.constant 0.000000e+00 : f32
    %6 = vector.broadcast %cst : f32 to vector<16x128xf32>
    %7 = arith.subf %6, %5 : vector<16x128xf32>
    %8 = math.exp %7 : vector<16x128xf32>
    %cst_4 = arith.constant 0.000000e+00 : f32
    %9 = vector.broadcast %cst_4 : f32 to vector<16x128xf32>
    %10 = arith.maximumf %3, %9 : vector<16x128xf32>
    %11 = arith.mulf %3, %4 : vector<16x128xf32>
    %12 = arith.subf %10, %11 : vector<16x128xf32>
    %13 = math.log1p %8 : vector<16x128xf32>
    %14 = arith.addf %12, %13 : vector<16x128xf32>
    %cst_5 = arith.constant 0.000000e+00 : f32
    %15 = vector.broadcast %cst_5 : f32 to vector<16x128xf32>
    %16 = arith.subf %15, %14 : vector<16x128xf32>
    %17 = math.exp %16 : vector<16x128xf32>
    %cst_6 = arith.constant 1.000000e+00 : f32
    %18 = vector.broadcast %cst_6 : f32 to vector<16x128xf32>
    %19 = arith.subf %18, %17 : vector<16x128xf32>
    %cst_7 = arith.constant 0.000000e+00 : f32
    %20 = vector.broadcast %cst_7 : f32 to vector<16x128xf32>
    %21 = arith.maximumf %19, %20 : vector<16x128xf32>
    %22 = arith.mulf %21, %21 : vector<16x128xf32>
    %cst_8 = arith.constant 2.500000e-01 : f32
    %23 = vector.broadcast %cst_8 : f32 to vector<16x128xf32>
    %24 = arith.mulf %23, %22 : vector<16x128xf32>
    %25 = arith.mulf %24, %14 : vector<16x128xf32>
    %c0_9 = arith.constant 0 : index
    %c0_10 = arith.constant 0 : index
    %26 = vector.load %arg4[%c0_9, %c0_10] : memref<1x128xf32, #tpu.memory_space<vmem>>, vector<1x128xf32>
    %cst_11 = arith.constant dense<0.000000e+00> : vector<128xf32>
    %27 = vector.multi_reduction <add>, %25, %cst_11 [0] : vector<16x128xf32> to vector<128xf32>
    %28 = vector.shape_cast %27 : vector<128xf32> to vector<1x128xf32>
    %29 = arith.addf %26, %28 : vector<1x128xf32>
    %c0_12 = arith.constant 0 : index
    %c0_13 = arith.constant 0 : index
    %30 = vector.load %arg4[%c0_12, %c0_13] : memref<1x128xf32, #tpu.memory_space<vmem>>, vector<1x128xf32>
    tpu.vector_store %arg4[%c0_12, %c0_13], %29 {strides = array<i32>} : memref<1x128xf32, #tpu.memory_space<vmem>>, vector<1x128xf32>,
    %c0_i32_14 = arith.constant 0 : i32
    %31 = arith.cmpi eq, %arg0, %c0_i32_14 : i32
    %32 = arith.extui %31 : i1 to i32
    %c0_i32_15 = arith.constant 0 : i32
    %33 = arith.cmpi ne, %32, %c0_i32_15 : i32
    scf.if %33 {
      %c0_16 = arith.constant 0 : index
      %c0_17 = arith.constant 0 : index
      %34 = vector.load %arg4[%c0_16, %c0_17] : memref<1x128xf32, #tpu.memory_space<vmem>>, vector<1x128xf32>
      %35 = vector.shape_cast %34 : vector<1x128xf32> to vector<1x1x128xf32>
      %cst_18 = arith.constant dense<0.000000e+00> : vector<1xf32>
      %36 = vector.multi_reduction <add>, %35, %cst_18 [1, 2] : vector<1x1x128xf32> to vector<1xf32>
      %37 = vector.shape_cast %36 : vector<1xf32> to vector<1x1x1xf32>
      %38 = vector.extract %37[0, 0, 0] : f32 from vector<1x1x1xf32>
      %c0_19 = arith.constant 0 : index
      %c0_20 = arith.constant 0 : index
      %39 = memref.load %arg3[%c0_19, %c0_20] : memref<1x1xf32, #tpu.memory_space<smem>>
      memref.store %38, %arg3[%c0_19, %c0_20] : memref<1x1xf32, #tpu.memory_space<smem>>
    } else {
    }
    return
  }
  func.func @transform_0(%arg0: i32) -> (i32, i32) {
    %c0_i32 = arith.constant 0 : i32
    %c0_i32_0 = arith.constant 0 : i32
    return %arg0, %c0_i32 : i32, i32
  }
  func.func @transform_1(%arg0: i32) -> (i32, i32) {
    %c0_i32 = arith.constant 0 : i32
    %c0_i32_0 = arith.constant 0 : i32
    return %arg0, %c0_i32 : i32, i32
  }
  func.func @transform_2(%arg0: i32) -> (i32, i32) {
    %c0_i32 = arith.constant 0 : i32
    %c0_i32_0 = arith.constant 0 : i32
    %c0_i32_1 = arith.constant 0 : i32
    return %c0_i32, %c0_i32_0 : i32, i32
  }
}

</mosaic_0001>

<bundles_post_ra>
// kernel: tpu_custom_call.1
= control target key start
LH: loop header
LB: loop body
LE: loop exit
PB: predicated region body
PF: predicated region fallthrough
CT: control target
= control target key end

     0   :  { %7 = vsyncpa [#allocation4], 0  ;;  %s245_s0 = inlined_call_operand.hbm [shape: f32[16,128], index: 0, kind: input, shape index: {}]   ;;  %s246_s1 = inlined_call_operand.hbm [shape: f32[16,128], index: 1, kind: input, shape index: {}]   ;;  %s247_s2 = inlined_call_operand.hbm [shape: f32[1,1], index: 2, kind: output, shape index: {}]  }
   0x1   :  { %8 = vsyncpa [#allocation7], 0 }
   0x2   :  { %9 = vsyncpa [#allocation5], 0  ;;  %s215_s9 = smov [#allocation3]  }
   0x3   :  { %s15_s10 = sshll.u32 %s215_s9, 4  ;;  %s16_s10 = int_to_ptr.vmem [resolvable:$true] %s15_s10 }
   0x4   :  { %s169_s11 = scalar_lea.vmem %s16_s10, 256  ;;  %p174_p1 = scmp.lt.s32.totalorder %s16_s10, %s16_s10 }
   0x5   :  { %p170_p0 = scmp.ne.s32.totalorder %s16_s10, %s169_s11  ;;  %p175_p2 = scmp.lt.s32.totalorder %s169_s11, %s169_s11 }
   0x7   :  { %p176_p3 = por %p175_p2, %p174_p1 }
   0x9   :  { %p177_p4 = pnand %p176_p3, %p170_p0 }
   0xb   :  { %180 = shalt.err (!%p177_p4)
}
   0xc   :  { %s216_s12 = smov 128   ;;  %s217_s13 = smov 8  }
   0xd   :  { %21 = dma.hbm_to_vmem [thread:$0]  %s245_s0, 256, %s16_s10, [#allocation4], %s216_s12, %s216_s12, %s217_s13  }
   0xe   :  { %s218_s16 = smov [#allocation6]  }
   0xf   :  { %s27_s17 = sshll.u32 %s218_s16, 4  ;;  %s28_s17 = int_to_ptr.vmem [resolvable:$true] %s27_s17 }
  0x10   :  { %s189_s18 = scalar_lea.vmem %s28_s17, 256  ;;  %p194_p6 = scmp.lt.s32.totalorder %s28_s17, %s28_s17 }
  0x11   :  { %p190_p5 = scmp.ne.s32.totalorder %s28_s17, %s189_s18  ;;  %p195_p7 = scmp.lt.s32.totalorder %s189_s18, %s189_s18 }
  0x13   :  { %p196_p8 = por %p195_p7, %p194_p6 }
  0x15   :  { %p197_p9 = pnand %p196_p8, %p190_p5 }
  0x17   :  { %200 = shalt.err (!%p197_p9)
}
  0x18   :  { %33 = dma.hbm_to_vmem [thread:$0]  %s246_s1, 256, %s28_s17, [#allocation7], %s216_s12, %s216_s12, %s217_s13  }
  0x19   :  { %209 = dma.done.wait [#allocation4], 256  }
  0x1a   :  { %210 = vsyncadd [#allocation4], 4294967040 }
  0x1b   :  { %211 = dma.done.wait [#allocation7], 256  }
  0x1c   :  { %212 = vsyncadd [#allocation7], 4294967040  ;;  %v219_v0 = vmov 0.0   ;;  %v45_v1 = vld [vmem:[#allocation3] sm:$0xff]  ;;  %v46_v2 = vld [vmem:[#allocation3 + $0x8] sm:$0xff]  ;;  %vm113_vm2 = vcmask 1040384  }
  0x1d   :  { %44 = vst [vmem:[#allocation2] sm:$0x1] %v219_v0  ;;  %v49_v3 = vand.u32 2147483647, %v45_v1  ;;  %v50_v4 = vand.u32 2147483647, %v46_v2 }
  0x1e   :  { %v47_v15 = vld [vmem:[#allocation6] sm:$0xff]  ;;  %v48_v16 = vld [vmem:[#allocation6 + $0x8] sm:$0xff]  ;;  %v57_v18 = vmax.f32 %v45_v1, 0.0  ;;  %v58_v22 = vmax.f32 %v46_v2, 0.0  ;;  %s220_s1 = smov [#allocation8]  }
  0x1f   :  { %v51_v5 = vsub.f32 0.0, %v49_v3  ;;  %v52_v6 = vsub.f32 0.0, %v50_v4  ;;  %v59_v19 = vmul.f32 %v47_v15, %v45_v1  ;;  %v60_v23 = vmul.f32 %v48_v16, %v46_v2 }
  0x21   :  { %v53_v7 = vmul.f32 1.442695, %v51_v5  ;;  %v55_v8 = vmul.f32 1.442695, %v52_v6  ;;  %v61_v27 = vsub.f32 %v57_v18, %v59_v19  ;;  %v62_v30 = vsub.f32 %v58_v22, %v60_v23 }
  0x23   :  { %149 = vpow2.f32 %v53_v7 }
  0x24   :  { %151 = vpow2.f32 %v55_v8  ;;  %v99_v59 = vld [vmem:[#allocation2] sm:$0x1] }
  0x30   :  { %v150_v9 = vpop.eup %149 }
  0x31   :  { %v152_v10 = vpop.eup %151  ;;  %v63_v11 = vadd.f32 1.0, %v150_v9  ;;  %v66_v13 = vmul.f32 -0.5, %v150_v9  ;;  %v69_v20 = vand.u32 2147483647, %v150_v9 }
  0x32   :  { %v72_v12 = vadd.f32 1.0, %v152_v10  ;;  %v75_v14 = vmul.f32 -0.5, %v152_v10  ;;  %v78_v24 = vand.u32 2147483647, %v152_v10 }
  0x33   :  { %153 = vlog2.f32 %v63_v11  ;;  %v67_v17 = vadd.f32 1.0, %v66_v13  ;;  %vm70_vm0 = vcmp.lt.f32.partialorder %v69_v20, 0.0004427343 }
  0x34   :  { %155 = vlog2.f32 %v72_v12  ;;  %v76_v21 = vadd.f32 1.0, %v75_v14  ;;  %vm79_vm1 = vcmp.lt.f32.partialorder %v78_v24, 0.0004427343 }
  0x35   :  { %v68_v25 = vmul.f32 %v150_v9, %v67_v17 }
  0x36   :  { %v77_v28 = vmul.f32 %v152_v10, %v76_v21 }
  0x40   :  { %v154_v26 = vpop.eup %153 }
  0x41   :  { %v156_v29 = vpop.eup %155  ;;  %v65_v31 = vmul.f32 0.6931472, %v154_v26 }
  0x42   :  { %v74_v32 = vmul.f32 0.6931472, %v156_v29 }
  0x43   :  { %v71_v33 = vsel %vm70_vm0, %v68_v25, %v65_v31 }
  0x44   :  { %v80_v34 = vsel %vm79_vm1, %v77_v28, %v74_v32  ;;  %v81_v35 = vadd.f32 %v71_v33, %v61_v27 }
  0x45   :  { %v82_v36 = vadd.f32 %v80_v34, %v62_v30 }
  0x46   :  { %v83_v37 = vsub.f32 0.0, %v81_v35 }
  0x47   :  { %v84_v38 = vsub.f32 0.0, %v82_v36 }
  0x48   :  { %v85_v39 = vmul.f32 1.442695, %v83_v37 }
  0x49   :  { %v87_v40 = vmul.f32 1.442695, %v84_v38 }
  0x4a   :  { %157 = vpow2.f32 %v85_v39 }
  0x4b   :  { %159 = vpow2.f32 %v87_v40 }
  0x57   :  { %v158_v41 = vpop.eup %157 }
  0x58   :  { %v160_v42 = vpop.eup %159  ;;  %v89_v43 = vsub.f32 1.0, %v158_v41 }
  0x59   :  { %v90_v44 = vsub.f32 1.0, %v160_v42 }
  0x5a   :  { %v91_v45 = vmax.f32 %v89_v43, 0.0 }
  0x5b   :  { %v92_v46 = vmax.f32 %v90_v44, 0.0 }
  0x5c   :  { %v93_v47 = vmul.f32 %v91_v45, %v91_v45 }
  0x5d   :  { %v94_v48 = vmul.f32 %v92_v46, %v92_v46 }
  0x5e   :  { %v95_v49 = vmul.f32 0.25, %v93_v47 }
  0x5f   :  { %v96_v50 = vmul.f32 0.25, %v94_v48 }
  0x60   :  { %v97_v51 = vmul.f32 %v95_v49, %v81_v35 }
  0x61   :  { %v98_v52 = vmul.f32 %v96_v50, %v82_v36 }
  0x63   :  { %v100_v53 = vadd.f32 %v98_v52, %v97_v51 }
  0x65   :  { %v101_v54 = vrot.slane %v100_v53, 4 }
  0x67   :  { %v102_v55 = vadd.f32 %v101_v54, %v100_v53 }
  0x69   :  { %v103_v56 = vrot.slane %v102_v55, 2 }
  0x6b   :  { %v104_v57 = vadd.f32 %v103_v56, %v102_v55 }
  0x6d   :  { %v105_v58 = vrot.slane %v104_v57, 1 }
  0x6f   :  { %v106_v60 = vadd.f32 %v105_v58, %v104_v57 }
  0x71   :  { %v107_v61 = vadd.f32 %v106_v60, %v99_v59 }
  0x73   :  { %108 = vst [vmem:[#allocation2] sm:$0x1] %v107_v61 }
  0x7a   :  { %v112_v62 = vld [vmem:[#allocation2] sm:$0x1] }
  0x7b   :  { %v114_v63 = vsel %vm113_vm2, %v112_v62, 0.0 }
  0x7c   :  { %115 = vadd.xlane.f32.xlu0 %v114_v63 }
 0x105   :  { %v116_v0 = vpop.xlane.xlu0 %115 }
 0x106   :  { %v117_v1 = vrot.slane %v116_v0, 4 }
 0x108   :  { %v118_v2 = vadd.f32 %v117_v1, %v116_v0 }
 0x10a   :  { %v119_v3 = vrot.slane %v118_v2, 2 }
 0x10c   :  { %v120_v4 = vadd.f32 %v119_v3, %v118_v2 }
 0x10e   :  { %v121_v5 = vrot.slane %v120_v4, 1 }
 0x110   :  { %v122_v6 = vadd.f32 %v121_v5, %v120_v4 }
 0x112   :  { %141 = vpush %v122_v6 }
 0x143   :  { %s142_s0 = spop %141 }
 0x144   :  { %125 = sst [smem:[#allocation8]] %s142_s0 }
 0x145   :  { %133 = dma.smem_to_hbm %s220_s1, 16, %s247_s2, [#allocation5]  }
 0x146   :  { %213 = dma.done.wait [#allocation5], 16  }
 0x147   :  { %214 = vsyncadd [#allocation5], 4294967280 }
 0x148   :  { %137 = sfence }
 0x149   :  { %138 = vsyncpa [#allocation4], 1 }
 0x14a   :  { %139 = vsyncpa [#allocation7], 1 }
 0x14b   :  { %140 = vsyncpa [#allocation5], 1 }

</bundles_post_ra>
